<compile_context>
chip_gen: v5e
topology: v5e:2x2
jax: 0.10.0
libtpu: 0.0.40
codegen_flags: <defaults>
</compile_context>

<pallas_src>
import functools

import jax
import jax.numpy as jnp
from jax import lax
from jax.experimental import pallas as pl
from jax.experimental.pallas import tpu as pltpu

# int8 asymmetric quantization "spec" (deterministic, in-script).
QMIN = -128.0
QMAX = 127.0
EPS = 1e-8
AVERAGING_CONSTANT = 0.01

LANES = 128
_MIB = 1024 * 1024
_NUM_SHARDS = 2  # v7x has 2 TensorCores; harmless (serialized) on v5e/v6e.


def _vmem_capacity_bytes():
    try:
        return int(pltpu.get_tpu_info().vmem_capacity_bytes)
    except Exception:
        return 64 * _MIB  # conservative fallback (v7x physical VMEM)


def _minmax_partial_kernel(x_ref, min_out_ref, max_out_ref, min_acc, max_acc, *,
                           blocks_per_shard, total_blocks, block_rows,
                           valid_rows_last, grain, lo_fill, hi_fill):
    """Streams row-blocks of the flattened tensor into per-shard (grain,128) min/max."""
    c = pl.program_id(0)  # shard axis ("parallel": split across TensorCores on v7x)
    j = pl.program_id(1)  # row-block within the shard ("arbitrary": reduction)

    @pl.when(j == 0)
    def _():
        min_acc[...] = jnp.full(min_acc.shape, jnp.inf, dtype=min_acc.dtype)
        max_acc[...] = jnp.full(max_acc.shape, -jnp.inf, dtype=max_acc.dtype)

    # Global block index (clamped; overhang iterations of the last shard re-process the
    # final block, which is harmless because min/max are idempotent).
    gb = jnp.minimum(c * blocks_per_shard + j, total_blocks - 1)
    k = block_rows // grain

    def _accumulate(x_for_min, x_for_max):
        # (block_rows,128) -> (k, grain, 128); axis-0 reduce combines whole vregs
        # element-wise (pure VALU, no cross-lane XLU work, no big accumulator traffic).
        gmin = jnp.min(x_for_min.reshape(k, grain, LANES), axis=0)
        gmax = jnp.max(x_for_max.reshape(k, grain, LANES), axis=0)
        min_acc[...] = jnp.minimum(min_acc[...], gmin.astype(jnp.float32))
        max_acc[...] = jnp.maximum(max_acc[...], gmax.astype(jnp.float32))

    if valid_rows_last == block_rows:
        # Rows divide evenly into blocks: no masking anywhere (common case).
        x = x_ref[...]
        _accumulate(x, x)
    else:
        @pl.when(gb != total_blocks - 1)
        def _():
            x = x_ref[...]
            _accumulate(x, x)

        @pl.when(gb == total_blocks - 1)
        def _():
            # Partial last block: rows past `valid_rows_last` hold garbage from the DMA;
            # mask them with min/max identities (row-only mask, no element-index math).
            x = x_ref[...]
            keep = lax.broadcasted_iota(jnp.int32, (block_rows, LANES), 0) < valid_rows_last
            _accumulate(jnp.where(keep, x, hi_fill), jnp.where(keep, x, lo_fill))

    @pl.when(j == pl.num_programs(1) - 1)
    def _():
        # One cheap cross-sublane reduce per shard; the lane reduce finishes in XLA.
        min_out_ref[...] = jnp.min(min_acc[...], axis=0, keepdims=True)
        max_out_ref[...] = jnp.max(max_acc[...], axis=0, keepdims=True)


def _tensor_minmax(x2d, *, grain, lo_fill, hi_fill, block_rows, vmem_limit_bytes):
    """Single streaming pass over a (rows, 128) slab -> global (min, max) as f32 scalars."""
    rows = x2d.shape[0]
    total_blocks = (rows + block_rows - 1) // block_rows
    num_shards = _NUM_SHARDS if total_blocks >= _NUM_SHARDS else 1
    blocks_per_shard = (total_blocks + num_shards - 1) // num_shards
    valid_rows_last = rows - (total_blocks - 1) * block_rows

    kernel = functools.partial(
        _minmax_partial_kernel,
        blocks_per_shard=blocks_per_shard, total_blocks=total_blocks,
        block_rows=block_rows, valid_rows_last=valid_rows_last,
        grain=grain, lo_fill=lo_fill, hi_fill=hi_fill)

    def x_index_map(c, j):
        return (jnp.minimum(c * blocks_per_shard + j, total_blocks - 1), 0)

    # TODO(synk): once blocks are large, sweep pipeline_mode=pl.Buffered(3) on the x spec
    # on v7x; expected to be a small (few %) DMA-issue-overhead win.
    pmin, pmax = pl.pallas_call(
        kernel,
        out_shape=(jax.ShapeDtypeStruct((num_shards, LANES), jnp.float32),
                   jax.ShapeDtypeStruct((num_shards, LANES), jnp.float32)),
        grid_spec=pltpu.PrefetchScalarGridSpec(
            num_scalar_prefetch=0,
            grid=(num_shards, blocks_per_shard),
            in_specs=[pl.BlockSpec((block_rows, LANES), x_index_map)],
            out_specs=[pl.BlockSpec((1, LANES), lambda c, j: (c, 0)),
                       pl.BlockSpec((1, LANES), lambda c, j: (c, 0))],
            scratch_shapes=[pltpu.VMEM((grain, LANES), jnp.float32),
                            pltpu.VMEM((grain, LANES), jnp.float32)]),
        compiler_params=pltpu.CompilerParams(
            dimension_semantics=("parallel", "arbitrary"),
            vmem_limit_bytes=vmem_limit_bytes),
    )(x2d)
    return jnp.min(pmin), jnp.max(pmax)


def ema_observer_forward(x, state, averaging_constant=AVERAGING_CONSTANT,
                         max_block_rows=None):
    """Functional equivalent of EMAInfoObserver.forward in training mode.

    state = (initialized_flag: float {0.,1.}, scale: f32 scalar, zero_point: f32 scalar)
    Returns the new (scale, zero_point) — i.e. the updated `self.info`.
    """
    # TODO(synk): frozen / eval path just returns the stored state; no kernel needed.
    initialized, prev_scale, prev_zp = state

    flat = x.reshape(-1)  # free for contiguous inputs
    n = flat.shape[0]
    dtype = flat.dtype
    itemsize = jnp.dtype(dtype).itemsize
    grain = {4: 8, 2: 16, 1: 32}.get(itemsize, 8)  # rows per vreg for this dtype

    if jnp.issubdtype(dtype, jnp.floating):
        lo_fill, hi_fill = float("-inf"), float("inf")
    else:
        ii = jnp.iinfo(dtype)
        lo_fill, hi_fill = int(ii.min), int(ii.max)

    # Grain-aligned bulk goes through the kernel; the tiny remainder (< grain*128
    # elements) is reduced in plain XLA.  No jnp.pad copy of the tensor.
    chunk = LANES * grain
    rows_main = (n // chunk) * grain
    main_elems = rows_main * LANES

    # Generation-aware block sizing against a conservative VMEM budget.
    vmem_cap = _vmem_capacity_bytes()
    budget = min(vmem_cap // 2, 40 * _MIB)
    # Worst-case VMEM per block row: double-buffered input + masked-tail-branch temps.
    per_row = 6 * LANES * itemsize + 8 * LANES
    block_rows = max(grain, (budget // per_row) // grain * grain)
    if max_block_rows is not None:  # testing hook: exercise multi-block/shard paths small
        block_rows = max(grain, min(block_rows, (max_block_rows // grain) * grain))
    vmem_limit = budget + 8 * _MIB

    g_min = g_max = None
    if rows_main > 0:
        block_rows = min(block_rows, rows_main)
        if main_elems == n:
            x2d = flat.reshape(rows_main, LANES)          # no copy
        else:
            x2d = flat[:main_elems].reshape(rows_main, LANES)
        g_min, g_max = _tensor_minmax(
            x2d, grain=grain, lo_fill=lo_fill, hi_fill=hi_fill,
            block_rows=block_rows, vmem_limit_bytes=vmem_limit)

    if main_elems != n:
        tail = flat[main_elems:]                          # tiny: < grain*128 elements
        t_min = jnp.min(tail).astype(jnp.float32)
        t_max = jnp.max(tail).astype(jnp.float32)
        g_min = t_min if g_min is None else jnp.minimum(g_min, t_min)
        g_max = t_max if g_max is None else jnp.maximum(g_max, t_max)

    # calibrate(x, spec): per-tensor asymmetric int8 (scalar work, plain XLA).
    mn = jnp.minimum(g_min, 0.0)
    mx = jnp.maximum(g_max, 0.0)
    scale = jnp.maximum((mx - mn) / (QMAX - QMIN), EPS)
    zp = QMIN - mn / scale

    # EMA update of the observer state (or plain init on the first call).
    a = averaging_constant
    init_f = jnp.asarray(initialized, jnp.float32)
    prev_s = jnp.asarray(prev_scale, jnp.float32)
    prev_z = jnp.asarray(prev_zp, jnp.float32)
    new_scale = jnp.where(init_f > 0.5, prev_s * (1.0 - a) + scale * a, scale)
    new_zp = jnp.where(init_f > 0.5, prev_z * (1.0 - a) + zp * a, zp)
    return new_scale, new_zp


def _ref_calibrate(x):
    xf = x.astype(jnp.float32)
    mn = jnp.minimum(jnp.min(xf), 0.0)
    mx = jnp.maximum(jnp.max(xf), 0.0)
    s = jnp.maximum((mx - mn) / (QMAX - QMIN), EPS)
    z = QMIN - mn / s
    return s, z


if __name__ == "__main__":
    key = jax.random.PRNGKey(0)
    k1, k2, k3, k4, k5 = jax.random.split(key, 5)

    fresh = (0.0, jnp.zeros(()), jnp.zeros(()))

    # --- step 1: NCHW activations, observer not yet initialized -> info = calibrate(x1) ---
    x1 = jax.random.normal(k1, (2, 4, 16, 16), jnp.float32)
    scale1, zp1 = ema_observer_forward(x1, fresh)
    s_ref1, z_ref1 = _ref_calibrate(x1)

    # --- step 2: initialized -> EMA update ---
    x2 = 2.0 * jax.random.normal(k2, (2, 4, 16, 16), jnp.float32) + 0.5
    scale2, zp2 = ema_observer_forward(x2, (1.0, scale1, zp1))
    s_ref2c, z_ref2c = _ref_calibrate(x2)
    a = AVERAGING_CONSTANT
    s_ref2 = s_ref1 * (1 - a) + s_ref2c * a
    z_ref2 = z_ref1 * (1 - a) + z_ref2c * a

    # --- step 3: tiny ragged tensor (< 1024 elems) -> pure XLA tail path ---
    x3 = jax.random.normal(k3, (3, 5, 7, 3), jnp.float32) - 1.5
    scale3, zp3 = ema_observer_forward(x3, fresh)
    s_ref3, z_ref3 = _ref_calibrate(x3)

    # --- step 4: ragged tensor + small block override -> multi-block, 2 shards,
    #             masked partial last block, XLA lane-tail ---
    x4 = jax.random.normal(k4, (2, 25, 65), jnp.float32) + 0.25
    scale4, zp4 = ema_observer_forward(x4, fresh, max_block_rows=16)
    s_ref4, z_ref4 = _ref_calibrate(x4)

    # --- step 5: bf16 activations stay bf16 through the streaming pass ---
    x5 = jax.random.normal(k5, (4, 16, 64), jnp.bfloat16)
    scale5, zp5 = ema_observer_forward(x5, fresh)
    s_ref5, z_ref5 = _ref_calibrate(x5)

    jax.block_until_ready((scale1, zp1, scale2, zp2, scale3, zp3,
                           scale4, zp4, scale5, zp5))

    assert jnp.allclose(scale1, s_ref1, rtol=1e-5, atol=1e-6), (scale1, s_ref1)
    assert jnp.allclose(zp1, z_ref1, rtol=1e-5, atol=1e-4), (zp1, z_ref1)
    assert jnp.allclose(scale2, s_ref2, rtol=1e-5, atol=1e-6), (scale2, s_ref2)
    assert jnp.allclose(zp2, z_ref2, rtol=1e-5, atol=1e-4), (zp2, z_ref2)
    assert jnp.allclose(scale3, s_ref3, rtol=1e-5, atol=1e-6), (scale3, s_ref3)
    assert jnp.allclose(zp3, z_ref3, rtol=1e-5, atol=1e-4), (zp3, z_ref3)
    assert jnp.allclose(scale4, s_ref4, rtol=1e-5, atol=1e-6), (scale4, s_ref4)
    assert jnp.allclose(zp4, z_ref4, rtol=1e-5, atol=1e-4), (zp4, z_ref4)
    assert jnp.allclose(scale5, s_ref5, rtol=1e-5, atol=1e-6), (scale5, s_ref5)
    assert jnp.allclose(zp5, z_ref5, rtol=1e-5, atol=1e-4), (zp5, z_ref5)

    print("KERNEL_OK")
</pallas_src>

<mosaic_0001>
module attributes {stable_mosaic.version = 11 : i64} {
  func.func @_minmax_partial_kernel(%arg0: i32, %arg1: i32, %arg2: memref<16x128xf32, #tpu.memory_space<vmem>>, %arg3: memref<1x128xf32, #tpu.memory_space<vmem>>, %arg4: memref<1x128xf32, #tpu.memory_space<vmem>>, %arg5: memref<8x128xf32, #tpu.memory_space<vmem>>, %arg6: memref<8x128xf32, #tpu.memory_space<vmem>>) attributes {dimension_semantics = [#tpu.dimension_semantics<parallel>, #tpu.dimension_semantics<arbitrary>], iteration_bounds = array<i64: 1, 1>, scalar_prefetch = 0 : i64, scratch_operands = 2 : i64, tpu.core_type = #tpu.core_type<tc>, window_params = [{transform_indices = @transform_0, window_bounds = array<i64: 16, 128>}, {transform_indices = @transform_1, window_bounds = array<i64: 1, 128>}, {transform_indices = @transform_2, window_bounds = array<i64: 1, 128>}]} {
    %c0_i32 = arith.constant 0 : i32
    %0 = arith.cmpi eq, %arg1, %c0_i32 : i32
    %1 = arith.extui %0 : i1 to i32
    %c0_i32_0 = arith.constant 0 : i32
    %2 = arith.cmpi ne, %1, %c0_i32_0 : i32
    scf.if %2 {
      %cst_13 = arith.constant 0x7F800000 : f32
      %17 = vector.broadcast %cst_13 : f32 to vector<8x128xf32>
      %c0_14 = arith.constant 0 : index
      %c0_15 = arith.constant 0 : index
      %18 = vector.load %arg5[%c0_14, %c0_15] : memref<8x128xf32, #tpu.memory_space<vmem>>, vector<8x128xf32>
      tpu.vector_store %arg5[%c0_14, %c0_15], %17 {strides = array<i32>} : memref<8x128xf32, #tpu.memory_space<vmem>>, vector<8x128xf32>,
      %cst_16 = arith.constant 0xFF800000 : f32
      %19 = vector.broadcast %cst_16 : f32 to vector<8x128xf32>
      %c0_17 = arith.constant 0 : index
      %c0_18 = arith.constant 0 : index
      %20 = vector.load %arg6[%c0_17, %c0_18] : memref<8x128xf32, #tpu.memory_space<vmem>>, vector<8x128xf32>
      tpu.vector_store %arg6[%c0_17, %c0_18], %19 {strides = array<i32>} : memref<8x128xf32, #tpu.memory_space<vmem>>, vector<8x128xf32>,
    } else {
    }
    %c0 = arith.constant 0 : index
    %c0_1 = arith.constant 0 : index
    %3 = vector.load %arg2[%c0, %c0_1] : memref<16x128xf32, #tpu.memory_space<vmem>>, vector<16x128xf32>
    %4 = vector.shape_cast %3 : vector<16x128xf32> to vector<2x8x128xf32>
    %cst = arith.constant dense<0x7F800000> : vector<8x128xf32>
    %5 = vector.multi_reduction <minimumf>, %4, %cst [0] : vector<2x8x128xf32> to vector<8x128xf32>
    %6 = vector.shape_cast %3 : vector<16x128xf32> to vector<2x8x128xf32>
    %cst_2 = arith.constant dense<0xFF800000> : vector<8x128xf32>
    %7 = vector.multi_reduction <maximumf>, %6, %cst_2 [0] : vector<2x8x128xf32> to vector<8x128xf32>
    %c0_3 = arith.constant 0 : index
    %c0_4 = arith.constant 0 : index
    %8 = vector.load %arg5[%c0_3, %c0_4] : memref<8x128xf32, #tpu.memory_space<vmem>>, vector<8x128xf32>
    %9 = arith.minimumf %8, %5 : vector<8x128xf32>
    %c0_5 = arith.constant 0 : index
    %c0_6 = arith.constant 0 : index
    %10 = vector.load %arg5[%c0_5, %c0_6] : memref<8x128xf32, #tpu.memory_space<vmem>>, vector<8x128xf32>
    tpu.vector_store %arg5[%c0_5, %c0_6], %9 {strides = array<i32>} : memref<8x128xf32, #tpu.memory_space<vmem>>, vector<8x128xf32>,
    %c0_7 = arith.constant 0 : index
    %c0_8 = arith.constant 0 : index
    %11 = vector.load %arg6[%c0_7, %c0_8] : memref<8x128xf32, #tpu.memory_space<vmem>>, vector<8x128xf32>
    %12 = arith.maximumf %11, %7 : vector<8x128xf32>
    %c0_9 = arith.constant 0 : index
    %c0_10 = arith.constant 0 : index
    %13 = vector.load %arg6[%c0_9, %c0_10] : memref<8x128xf32, #tpu.memory_space<vmem>>, vector<8x128xf32>
    tpu.vector_store %arg6[%c0_9, %c0_10], %12 {strides = array<i32>} : memref<8x128xf32, #tpu.memory_space<vmem>>, vector<8x128xf32>,
    %c0_i32_11 = arith.constant 0 : i32
    %14 = arith.cmpi eq, %arg1, %c0_i32_11 : i32
    %15 = arith.extui %14 : i1 to i32
    %c0_i32_12 = arith.constant 0 : i32
    %16 = arith.cmpi ne, %15, %c0_i32_12 : i32
    scf.if %16 {
      %c0_13 = arith.constant 0 : index
      %c0_14 = arith.constant 0 : index
      %17 = vector.load %arg5[%c0_13, %c0_14] : memref<8x128xf32, #tpu.memory_space<vmem>>, vector<8x128xf32>
      %cst_15 = arith.constant dense<0x7F800000> : vector<128xf32>
      %18 = vector.multi_reduction <minimumf>, %17, %cst_15 [0] : vector<8x128xf32> to vector<128xf32>
      %19 = vector.shape_cast %18 : vector<128xf32> to vector<1x128xf32>
      %c0_16 = arith.constant 0 : index
      %c0_17 = arith.constant 0 : index
      %20 = vector.load %arg3[%c0_16, %c0_17] : memref<1x128xf32, #tpu.memory_space<vmem>>, vector<1x128xf32>
      tpu.vector_store %arg3[%c0_16, %c0_17], %19 {strides = array<i32>} : memref<1x128xf32, #tpu.memory_space<vmem>>, vector<1x128xf32>,
      %c0_18 = arith.constant 0 : index
      %c0_19 = arith.constant 0 : index
      %21 = vector.load %arg6[%c0_18, %c0_19] : memref<8x128xf32, #tpu.memory_space<vmem>>, vector<8x128xf32>
      %cst_20 = arith.constant dense<0xFF800000> : vector<128xf32>
      %22 = vector.multi_reduction <maximumf>, %21, %cst_20 [0] : vector<8x128xf32> to vector<128xf32>
      %23 = vector.shape_cast %22 : vector<128xf32> to vector<1x128xf32>
      %c0_21 = arith.constant 0 : index
      %c0_22 = arith.constant 0 : index
      %24 = vector.load %arg4[%c0_21, %c0_22] : memref<1x128xf32, #tpu.memory_space<vmem>>, vector<1x128xf32>
      tpu.vector_store %arg4[%c0_21, %c0_22], %23 {strides = array<i32>} : memref<1x128xf32, #tpu.memory_space<vmem>>, vector<1x128xf32>,
    } else {
    }
    return
  }
  func.func @transform_0(%arg0: i32, %arg1: i32) -> (i32, i32) {
    %c1_i32 = arith.constant 1 : i32
    %0 = arith.muli %arg0, %c1_i32 : i32
    %1 = arith.addi %0, %arg1 : i32
    %c0_i32 = arith.constant 0 : i32
    %2 = arith.minsi %1, %c0_i32 : i32
    %c0_i32_0 = arith.constant 0 : i32
    %c0_i32_1 = arith.constant 0 : i32
    return %2, %c0_i32_0 : i32, i32
  }
  func.func @transform_1(%arg0: i32, %arg1: i32) -> (i32, i32) {
    %c0_i32 = arith.constant 0 : i32
    %c0_i32_0 = arith.constant 0 : i32
    return %arg0, %c0_i32 : i32, i32
  }
  func.func @transform_2(%arg0: i32, %arg1: i32) -> (i32, i32) {
    %c0_i32 = arith.constant 0 : i32
    %c0_i32_0 = arith.constant 0 : i32
    return %arg0, %c0_i32 : i32, i32
  }
}

</mosaic_0001>

<bundles_post_ra>
// kernel: tpu_custom_call.1
= control target key start
LH: loop header
LB: loop body
LE: loop exit
PB: predicated region body
PF: predicated region fallthrough
CT: control target
= control target key end

     0   :  { %8 = vsyncpa [#allocation5], 0  ;;  %s220_s0 = inlined_call_operand.hbm [shape: f32[16,128], index: 0, kind: input, shape index: {}]   ;;  %s221_s1 = inlined_call_operand.hbm [shape: f32[1,128], index: 1, kind: output, shape index: {0}]   ;;  %s222_s2 = inlined_call_operand.hbm [shape: f32[1,128], index: 2, kind: output, shape index: {1}]  }
   0x1   :  { %9 = vsyncpa [#allocation6], 0 }
   0x2   :  { %10 = vsyncpa [#allocation9], 0  ;;  %s21_s11 = sshll.u32 %s220_s0, 4  ;;  %s191_s12 = smov [#allocation4]   ;;  %s22_s11 = int_to_ptr.hbm [resolvable:$true] %s21_s11 }
   0x3   :  { %s23_s13 = sshll.u32 %s191_s12, 4  ;;  %s192_s14 = smov 128   ;;  %s24_s13 = int_to_ptr.vmem [resolvable:$true] %s23_s13 }
   0x4   :  { %s193_s15 = smov 8  }
   0x5   :  { %29 = dma.hbm_to_vmem [thread:$0]  %s22_s11, 256, %s24_s13, [#allocation5], %s192_s14, %s192_s14, %s193_s15  }
   0x6   :  { %185 = dma.done.wait [#allocation5], 256  }
   0x7   :  { %186 = vsyncadd [#allocation5], 4294967040  ;;  %v44_v0 = vld [vmem:[#allocation4] sm:$0xff]  ;;  %v45_v1 = vld [vmem:[#allocation4 + $0x8] sm:$0xff]  ;;  %s194_s0 = smov [#allocation7]   ;;  %s80_s19 = sshll.u32 %s221_s1, 4  ;;  %s81_s19 = int_to_ptr.hbm [resolvable:$true] %s80_s19 }
   0x8   :  { %v46_v2 = vmin.f32 %v44_v0, %v45_v1  ;;  %v47_v3 = vmax.f32 %v44_v0, %v45_v1  ;;  %s78_s16 = sshll.u32 %s194_s0, 4  ;;  %s195_s20 = smov [#allocation8]   ;;  %s79_s16 = int_to_ptr.vmem [resolvable:$true] %s78_s16 }
   0x9   :  { %s89_s21 = sshll.u32 %s195_s20, 4  ;;  %s91_s24 = sshll.u32 %s222_s2, 4  ;;  %s90_s21 = int_to_ptr.vmem [resolvable:$true] %s89_s21  ;;  %s92_s24 = int_to_ptr.hbm [resolvable:$true] %s91_s24 }
   0xa   :  { %v58_v4 = vrot.slane %v46_v2, 4  ;;  %v66_v5 = vrot.slane %v47_v3, 4 }
   0xc   :  { %v59_v6 = vmin.f32 %v46_v2, %v58_v4  ;;  %v67_v7 = vmax.f32 %v47_v3, %v66_v5 }
   0xe   :  { %v60_v8 = vrot.slane %v59_v6, 2  ;;  %v68_v9 = vrot.slane %v67_v7, 2 }
  0x10   :  { %v61_v10 = vmin.f32 %v59_v6, %v60_v8  ;;  %v69_v11 = vmax.f32 %v67_v7, %v68_v9 }
  0x12   :  { %v62_v12 = vrot.slane %v61_v10, 1  ;;  %v70_v13 = vrot.slane %v69_v11, 1 }
  0x14   :  { %v63_v14 = vmin.f32 %v61_v10, %v62_v12  ;;  %v71_v15 = vmax.f32 %v69_v11, %v70_v13 }
  0x16   :  { %64 = vst [vmem:[#allocation7] sm:$0x1] %v63_v14 }
  0x17   :  { %72 = vst [vmem:[#allocation8] sm:$0x1] %v71_v15  ;;  %83 = dma.vmem_to_hbm [thread:$0]  %s79_s16, 16, %s81_s19, [#allocation6]  }
  0x18   :  { %94 = dma.vmem_to_hbm [thread:$0]  %s90_s21, 16, %s92_s24, [#allocation9]  }
  0x19   :  { %187 = dma.done.wait [#allocation6], 16  }
  0x1a   :  { %188 = vsyncadd [#allocation6], 4294967280 }
  0x1b   :  { %189 = dma.done.wait [#allocation9], 16  }
  0x1c   :  { %190 = vsyncadd [#allocation9], 4294967280 }
  0x1d   :  { %103 = vsyncpa [#allocation5], 1 }
  0x1e   :  { %104 = vsyncpa [#allocation6], 1 }
  0x1f   :  { %105 = vsyncpa [#allocation9], 1 }

</bundles_post_ra>
